<compile_context>
chip_gen: v5e
topology: v5e:2x2
jax: 0.10.0
libtpu: 0.0.40
codegen_flags: <defaults>
</compile_context>

<pallas_src>
import functools
import math

import jax
import jax.numpy as jnp
from jax.experimental import pallas as pl
from jax.experimental.pallas import tpu as pltpu


def _round_up(x, m):
    return -(-int(x) // int(m)) * int(m)


# ----------------------------------------------------------------------------
# Kernel 1: vocab-tiled projection + online logsumexp
#   logits[i-tile, j-tile] = h[i-tile] @ Wt[:, j-tile]     (bf16 MXU, f32 acc)
#   lse[i-tile]            = logsumexp over the real vocab (online, f32)
# ----------------------------------------------------------------------------

def _make_proj_lse_kernel(tn, v_real, v_pad):
    needs_mask = v_real < v_pad  # static

    def kernel(h_ref, w_ref, logits_ref, lse_ref, m_sc, l_sc):
        j = pl.program_id(1)

        @pl.when(j == 0)
        def _():
            m_sc[...] = jnp.full(m_sc.shape, -jnp.inf, dtype=m_sc.dtype)
            l_sc[...] = jnp.zeros(l_sc.shape, dtype=l_sc.dtype)

        # (tm, H) @ (H, tn) -> (tm, tn), f32 accumulate on the MXU.
        part = jnp.dot(h_ref[...], w_ref[...],
                       preferred_element_type=jnp.float32)
        logits_ref[...] = part.astype(logits_ref.dtype)

        if needs_mask:
            # Only the online max / sum see -inf; the stored logits keep the
            # (finite, zero-weight) padded values and are sliced off later.
            col = j * tn + jax.lax.broadcasted_iota(jnp.int32, part.shape, 1)
            part = jnp.where(col < v_real, part, -jnp.inf)

        m_prev = m_sc[...]
        m_new = jnp.maximum(m_prev, jnp.max(part, axis=-1, keepdims=True))
        l_sc[...] = (jnp.exp(m_prev - m_new) * l_sc[...]
                     + jnp.sum(jnp.exp(part - m_new), axis=-1, keepdims=True))
        m_sc[...] = m_new

        @pl.when(j == pl.num_programs(1) - 1)
        def _():
            lse_ref[...] = m_sc[...] + jnp.log(l_sc[...])

    return kernel


# ----------------------------------------------------------------------------
# Kernel 2: cheap mem-bound sweep  log_probas = logits - lse
# ----------------------------------------------------------------------------

def _logp_kernel(logits_ref, lse_ref, logp_ref):
    logp_ref[...] = logits_ref[...].astype(jnp.float32) - lse_ref[...]


def proj_log_softmax(hidden_flat, w, *, tm=512, tn=2048,
                     logits_dtype=jnp.float32):
    """Fused projection + log_softmax.

    hidden_flat: (M, H) flattened last hidden states.
    w:           (V, H) trainable_layer weight (PyTorch Linear layout).
    Returns (logits (M, V), log_probas (M, V) f32).

    logits_dtype=jnp.bfloat16 cuts vocab-output HBM traffic ~33% (the review's
    suggestion); default f32 keeps the module's output semantics exactly.
    """
    M, H = hidden_flat.shape
    V, H2 = w.shape
    assert H == H2, "hidden size mismatch"

    # --- tile / padding geometry (all static Python ints) -------------------
    tn = max(128, (int(tn) // 128) * 128)
    tn = min(tn, _round_up(V, 128))          # don't over-pad tiny vocabs
    v_pad = _round_up(V, tn)

    tm_req = max(8, (int(tm) // 8) * 8)
    half_rows = max(1, _round_up(M, 2) // 2)
    tm = min(tm_req, max(8, _round_up(half_rows, 8)))
    # Keep the row grid even (>=2 tiles) when there is enough work so both
    # v7x TensorCores get balanced "parallel" row tiles.
    m_pad = _round_up(M, 2 * tm) if M > tm else _round_up(M, tm)

    grid = (m_pad // tm, v_pad // tn)

    # --- bf16 operands; weight transposed ONCE to (H, V) --------------------
    h = hidden_flat.astype(jnp.bfloat16)
    wt = w.astype(jnp.bfloat16).T                       # (H, V)
    if m_pad != M:
        h = jnp.pad(h, ((0, m_pad - M), (0, 0)))
    if v_pad != V:
        wt = jnp.pad(wt, ((0, 0), (0, v_pad - V)))

    lb = jnp.dtype(logits_dtype).itemsize

    # --- VMEM budgets (<= 56 MiB: headroom on v7x's 64 MiB physical) --------
    blk1 = (2 * tm * H * 2          # hidden tile, double-buffered, bf16
            + 2 * H * tn * 2        # weight tile, double-buffered, bf16
            + 2 * tm * tn * lb      # streamed logits tile, double-buffered
            + 4 * tm * 4            # lse out + m/l scratch (tiny)
            )
    vmem1 = int(min(max(blk1 + (8 << 20), 16 << 20), 56 << 20))

    cost1 = pl.CostEstimate(
        flops=2 * m_pad * H * v_pad,
        transcendentals=m_pad * v_pad,
        bytes_accessed=(m_pad * H * 2 + grid[0] * v_pad * H * 2
                        + m_pad * v_pad * lb + m_pad * 4))

    logits_p, lse = pl.pallas_call(
        _make_proj_lse_kernel(tn, V, v_pad),
        out_shape=(
            jax.ShapeDtypeStruct((m_pad, v_pad), logits_dtype),
            jax.ShapeDtypeStruct((m_pad, 1), jnp.float32),
        ),
        grid_spec=pltpu.PrefetchScalarGridSpec(
            num_scalar_prefetch=0,
            grid=grid,
            in_specs=[
                pl.BlockSpec((tm, H), lambda i, j: (i, 0)),   # hidden row tile
                pl.BlockSpec((H, tn), lambda i, j: (0, j)),   # streamed weight
            ],
            out_specs=[
                pl.BlockSpec((tm, tn), lambda i, j: (i, j)),  # streamed logits
                pl.BlockSpec((tm, 1), lambda i, j: (i, 0)),   # resident lse
            ],
            scratch_shapes=[
                pltpu.VMEM((tm, 1), jnp.float32),             # running max
                pltpu.VMEM((tm, 1), jnp.float32),             # running sum
            ],
        ),
        compiler_params=pltpu.CompilerParams(
            dimension_semantics=("parallel", "arbitrary"),
            vmem_limit_bytes=vmem1),
        cost_estimate=cost1,
    )(h, wt)

    blk2 = 2 * tm * tn * lb + 2 * tm * 4 + 2 * tm * tn * 4
    vmem2 = int(min(max(blk2 + (8 << 20), 16 << 20), 56 << 20))
    cost2 = pl.CostEstimate(
        flops=m_pad * v_pad,
        transcendentals=0,
        bytes_accessed=m_pad * v_pad * (lb + 4) + m_pad * 4)

    logp = pl.pallas_call(
        _logp_kernel,
        out_shape=jax.ShapeDtypeStruct((m_pad, v_pad), jnp.float32),
        grid_spec=pltpu.PrefetchScalarGridSpec(
            num_scalar_prefetch=0,
            grid=grid,
            in_specs=[
                pl.BlockSpec((tm, tn), lambda i, j: (i, j)),
                pl.BlockSpec((tm, 1), lambda i, j: (i, 0)),
            ],
            out_specs=pl.BlockSpec((tm, tn), lambda i, j: (i, j)),
        ),
        compiler_params=pltpu.CompilerParams(
            dimension_semantics=("parallel", "parallel"),
            vmem_limit_bytes=vmem2),
        cost_estimate=cost2,
    )(logits_p, lse)

    return logits_p[:M, :V], logp[:M, :V]


# ----------------------------------------------------------------------------
# Small deterministic GPT2-style backbone (frozen, plain JAX glue).
# TODO(synk): pretrained GPT2LMHeadModel.from_pretrained('cache/gpt2') cannot
#             be reproduced here; a tiny synthetic GPT2 block stack stands in.
# ----------------------------------------------------------------------------

def init_backbone_params(key, vocab_size, hidden, n_layer, max_pos):
    ks = iter(jax.random.split(key, 2 + 4 * n_layer))
    scale = 0.02
    p = {
        "wte": scale * jax.random.normal(next(ks), (vocab_size, hidden), jnp.float32),
        "wpe": scale * jax.random.normal(next(ks), (max_pos, hidden), jnp.float32),
        "lnf_g": jnp.ones((hidden,), jnp.float32),
        "lnf_b": jnp.zeros((hidden,), jnp.float32),
        "blocks": [],
    }
    for _ in range(n_layer):
        blk = {
            "ln1_g": jnp.ones((hidden,), jnp.float32),
            "ln1_b": jnp.zeros((hidden,), jnp.float32),
            "w_qkv": scale * jax.random.normal(next(ks), (hidden, 3 * hidden), jnp.float32),
            "b_qkv": jnp.zeros((3 * hidden,), jnp.float32),
            "w_proj": scale * jax.random.normal(next(ks), (hidden, hidden), jnp.float32),
            "b_proj": jnp.zeros((hidden,), jnp.float32),
            "ln2_g": jnp.ones((hidden,), jnp.float32),
            "ln2_b": jnp.zeros((hidden,), jnp.float32),
            "w_fc": scale * jax.random.normal(next(ks), (hidden, 4 * hidden), jnp.float32),
            "b_fc": jnp.zeros((4 * hidden,), jnp.float32),
            "w_out": scale * jax.random.normal(next(ks), (4 * hidden, hidden), jnp.float32),
            "b_out": jnp.zeros((hidden,), jnp.float32),
        }
        p["blocks"].append(blk)
    return p


def _layer_norm(x, g, b, eps=1e-5):
    mu = jnp.mean(x, axis=-1, keepdims=True)
    var = jnp.var(x, axis=-1, keepdims=True)
    return (x - mu) * jax.lax.rsqrt(var + eps) * g + b


def _gelu(x):
    # GPT2 uses tanh-approximate GELU
    return 0.5 * x * (1.0 + jnp.tanh(
        jnp.sqrt(2.0 / jnp.pi) * (x + 0.044715 * x ** 3)))


def backbone_forward(params, input_ids, n_head, attn_mask=None):
    """n_head must be a static Python int (kept OUT of the params pytree)."""
    B, S = input_ids.shape
    H = params["wte"].shape[1]
    nh = int(n_head)
    dh = H // nh

    x = params["wte"][input_ids] + params["wpe"][jnp.arange(S)][None, :, :]

    causal = jnp.tril(jnp.ones((S, S), jnp.float32))[None, None]   # (1,1,S,S)
    if attn_mask is not None:
        pad = attn_mask.astype(jnp.float32)[:, None, None, :]      # (B,1,1,S)
        mask = causal * pad
    else:
        mask = causal
    neg = jnp.float32(-1e9)

    for blk in params["blocks"]:
        h = _layer_norm(x, blk["ln1_g"], blk["ln1_b"])
        qkv = h @ blk["w_qkv"] + blk["b_qkv"]
        q, k, v = jnp.split(qkv, 3, axis=-1)

        def heads(t):
            return t.reshape(B, S, nh, dh).transpose(0, 2, 1, 3)   # (B,nh,S,dh)

        q, k, v = heads(q), heads(k), heads(v)
        att = jnp.einsum("bhqd,bhkd->bhqk", q, k) / jnp.sqrt(jnp.float32(dh))
        att = jnp.where(mask > 0, att, neg)
        att = jax.nn.softmax(att, axis=-1)
        o = jnp.einsum("bhqk,bhkd->bhqd", att, v)
        o = o.transpose(0, 2, 1, 3).reshape(B, S, H)
        x = x + o @ blk["w_proj"] + blk["b_proj"]

        h2 = _layer_norm(x, blk["ln2_g"], blk["ln2_b"])
        m = _gelu(h2 @ blk["w_fc"] + blk["b_fc"])
        x = x + m @ blk["w_out"] + blk["b_out"]

    x = _layer_norm(x, params["lnf_g"], params["lnf_b"])
    return x  # last hidden state (B, S, H)


# ----------------------------------------------------------------------------
# GPT2FTModel.forward equivalent
# ----------------------------------------------------------------------------

@functools.partial(jax.jit, static_argnames=("n_head",))
def gpt2ft_forward(params, trainable_w, input_ids, *, n_head, attn_mask=None):
    """Returns (log_probas (B*S, V), logits (B, S, V)) — matches the PyTorch forward."""
    hidden = backbone_forward(params, input_ids, n_head, attn_mask)   # (B, S, H)
    B, S, H = hidden.shape
    V = trainable_w.shape[0]
    hidden_flat = hidden.reshape(B * S, H)
    # Defaults target real GPT2 shapes (tm=512, tn=2048); both are clamped
    # automatically for toy shapes.
    logits_flat, logp_flat = proj_log_softmax(hidden_flat, trainable_w)
    logits = logits_flat.astype(jnp.float32).reshape(B, S, V)
    return logp_flat, logits


if __name__ == "__main__":
    # small shapes consistent with the module
    B, S = 2, 8
    HIDDEN = 64
    VOCAB = 320          # NOT a multiple of 128 -> exercises the pad+mask path
    N_LAYER, N_HEAD, MAX_POS = 2, 4, 16

    key = jax.random.PRNGKey(0)
    k_back, k_ids = jax.random.split(key)

    params = init_backbone_params(k_back, VOCAB, HIDDEN, N_LAYER, MAX_POS)
    # trainable_layer initialized from (tied) lm_head weight = wte, shape (V, H)
    trainable_w = params["wte"]

    input_ids = jax.random.randint(k_ids, (B, S), 0, VOCAB, dtype=jnp.int32)

    log_probas, logits = gpt2ft_forward(params, trainable_w, input_ids, n_head=N_HEAD)
    jax.block_until_ready((log_probas, logits))

    assert log_probas.shape == (B * S, VOCAB)
    assert logits.shape == (B, S, VOCAB)

    # log_softmax rows must normalize to ~1
    row_sums = jnp.sum(jnp.exp(log_probas), axis=-1)
    assert jnp.allclose(row_sums, 1.0, atol=1e-4)

    # consistency: log_probas == log_softmax(logits)
    assert jnp.allclose(
        log_probas, jax.nn.log_softmax(logits.reshape(B * S, VOCAB), axis=-1),
        atol=1e-4, rtol=1e-4)

    # reference check against a plain-JAX projection on the same bf16 operands
    hidden_ref = backbone_forward(params, input_ids, N_HEAD, None)
    hflat = hidden_ref.reshape(B * S, HIDDEN).astype(jnp.bfloat16).astype(jnp.float32)
    wref = trainable_w.astype(jnp.bfloat16).astype(jnp.float32)
    ref_logits = jnp.dot(hflat, wref.T, precision=jax.lax.Precision.HIGHEST)
    ref_logp = jax.nn.log_softmax(ref_logits, axis=-1)
    assert jnp.allclose(logits.reshape(B * S, VOCAB), ref_logits, atol=1e-2, rtol=1e-2)
    assert jnp.allclose(log_probas, ref_logp, atol=1e-2, rtol=1e-2)

    # extra: exercise the multi-vocab-tile online-logsumexp path explicitly
    # (tn=128 -> 3 vocab tiles at V=320, last tile half-padded; tm=8 -> 2 row tiles)
    k_logits, k_logp = proj_log_softmax(
        hidden_ref.reshape(B * S, HIDDEN), trainable_w, tm=8, tn=128)
    jax.block_until_ready((k_logits, k_logp))
    assert jnp.allclose(k_logits, ref_logits, atol=1e-2, rtol=1e-2)
    assert jnp.allclose(k_logp, ref_logp, atol=1e-2, rtol=1e-2)
    assert jnp.allclose(jnp.sum(jnp.exp(k_logp), axis=-1), 1.0, atol=1e-4)

    print("KERNEL_OK")
</pallas_src>

<mosaic_0001>
module attributes {stable_mosaic.version = 11 : i64} {
  func.func @_logp_kernel(%arg0: i32, %arg1: i32, %arg2: memref<8x384xf32, #tpu.memory_space<vmem>>, %arg3: memref<8x1xf32, #tpu.memory_space<vmem>>, %arg4: memref<8x384xf32, #tpu.memory_space<vmem>>) attributes {dimension_semantics = [#tpu.dimension_semantics<parallel>, #tpu.dimension_semantics<parallel>], iteration_bounds = array<i64: 2, 1>, scalar_prefetch = 0 : i64, scratch_operands = 0 : i64, tpu.core_type = #tpu.core_type<tc>, window_params = [{transform_indices = @transform_0, window_bounds = array<i64: 8, 384>}, {transform_indices = @transform_1, window_bounds = array<i64: 8, 1>}, {transform_indices = @transform_2, window_bounds = array<i64: 8, 384>}]} {
    %c0 = arith.constant 0 : index
    %c0_0 = arith.constant 0 : index
    %0 = vector.load %arg2[%c0, %c0_0] : memref<8x384xf32, #tpu.memory_space<vmem>>, vector<8x384xf32>
    %c0_1 = arith.constant 0 : index
    %c0_2 = arith.constant 0 : index
    %1 = vector.load %arg3[%c0_1, %c0_2] : memref<8x1xf32, #tpu.memory_space<vmem>>, vector<8x1xf32>
    %2 = vector.broadcast %1 : vector<8x1xf32> to vector<8x384xf32>
    %3 = arith.subf %0, %2 : vector<8x384xf32>
    %c0_3 = arith.constant 0 : index
    %c0_4 = arith.constant 0 : index
    %4 = vector.load %arg4[%c0_3, %c0_4] : memref<8x384xf32, #tpu.memory_space<vmem>>, vector<8x384xf32>
    tpu.vector_store %arg4[%c0_3, %c0_4], %3 {strides = array<i32>} : memref<8x384xf32, #tpu.memory_space<vmem>>, vector<8x384xf32>,
    return
  }
  func.func @transform_0(%arg0: i32, %arg1: i32) -> (i32, i32) {
    %c0_i32 = arith.constant 0 : i32
    return %arg0, %arg1 : i32, i32
  }
  func.func @transform_1(%arg0: i32, %arg1: i32) -> (i32, i32) {
    %c0_i32 = arith.constant 0 : i32
    %c0_i32_0 = arith.constant 0 : i32
    return %arg0, %c0_i32 : i32, i32
  }
  func.func @transform_2(%arg0: i32, %arg1: i32) -> (i32, i32) {
    %c0_i32 = arith.constant 0 : i32
    return %arg0, %arg1 : i32, i32
  }
}

module attributes {stable_mosaic.version = 11 : i64} {
  func.func @kernel(%arg0: i32, %arg1: i32, %arg2: memref<8x64xbf16, #tpu.memory_space<vmem>>, %arg3: memref<64x384xbf16, #tpu.memory_space<vmem>>, %arg4: memref<8x384xf32, #tpu.memory_space<vmem>>, %arg5: memref<8x1xf32, #tpu.memory_space<vmem>>, %arg6: memref<8x1xf32, #tpu.memory_space<vmem>>, %arg7: memref<8x1xf32, #tpu.memory_space<vmem>>) attributes {dimension_semantics = [#tpu.dimension_semantics<parallel>, #tpu.dimension_semantics<arbitrary>], iteration_bounds = array<i64: 2, 1>, scalar_prefetch = 0 : i64, scratch_operands = 2 : i64, tpu.core_type = #tpu.core_type<tc>, window_params = [{transform_indices = @transform_0, window_bounds = array<i64: 8, 64>}, {transform_indices = @transform_1, window_bounds = array<i64: 64, 384>}, {transform_indices = @transform_2, window_bounds = array<i64: 8, 384>}, {transform_indices = @transform_3, window_bounds = array<i64: 8, 1>}]} {
    %c0_i32 = arith.constant 0 : i32
    %0 = arith.cmpi eq, %arg1, %c0_i32 : i32
    %1 = arith.extui %0 : i1 to i32
    %c0_i32_0 = arith.constant 0 : i32
    %2 = arith.cmpi ne, %1, %c0_i32_0 : i32
    scf.if %2 {
      %cst_19 = arith.constant 0xFF800000 : f32
      %34 = vector.broadcast %cst_19 : f32 to vector<8x1xf32>
      %c0_20 = arith.constant 0 : index
      %c0_21 = arith.constant 0 : index
      %35 = vector.load %arg6[%c0_20, %c0_21] : memref<8x1xf32, #tpu.memory_space<vmem>>, vector<8x1xf32>
      tpu.vector_store %arg6[%c0_20, %c0_21], %34 {strides = array<i32>} : memref<8x1xf32, #tpu.memory_space<vmem>>, vector<8x1xf32>,
      %cst_22 = arith.constant 0.000000e+00 : f32
      %36 = vector.broadcast %cst_22 : f32 to vector<8x1xf32>
      %c0_23 = arith.constant 0 : index
      %c0_24 = arith.constant 0 : index
      %37 = vector.load %arg7[%c0_23, %c0_24] : memref<8x1xf32, #tpu.memory_space<vmem>>, vector<8x1xf32>
      tpu.vector_store %arg7[%c0_23, %c0_24], %36 {strides = array<i32>} : memref<8x1xf32, #tpu.memory_space<vmem>>, vector<8x1xf32>,
    } else {
    }
    %c0 = arith.constant 0 : index
    %c0_1 = arith.constant 0 : index
    %3 = vector.load %arg2[%c0, %c0_1] : memref<8x64xbf16, #tpu.memory_space<vmem>>, vector<8x64xbf16>
    %c0_2 = arith.constant 0 : index
    %c0_3 = arith.constant 0 : index
    %4 = vector.load %arg3[%c0_2, %c0_3] : memref<64x384xbf16, #tpu.memory_space<vmem>>, vector<64x384xbf16>
    %cst = arith.constant dense<0.000000e+00> : vector<8x384xf32>
    %5 = tpu.matmul %3, %4, %cst {dimension_numbers = #tpu.dot_dimension_numbers<[1], [0], [0], [1], [0, 0, 1, 1], [], []>} : vector<8x64xbf16>, vector<64x384xbf16>, vector<8x384xf32> -> vector<8x384xf32>
    %c0_4 = arith.constant 0 : index
    %c0_5 = arith.constant 0 : index
    %6 = vector.load %arg4[%c0_4, %c0_5] : memref<8x384xf32, #tpu.memory_space<vmem>>, vector<8x384xf32>
    tpu.vector_store %arg4[%c0_4, %c0_5], %5 {strides = array<i32>} : memref<8x384xf32, #tpu.memory_space<vmem>>, vector<8x384xf32>,
    %c384_i32 = arith.constant 384 : i32
    %7 = arith.muli %arg1, %c384_i32 : i32
    %8 = tpu.iota {dimensions = array<i32: 1>} : vector<8x384xi32>
    %9 = vector.broadcast %7 : i32 to vector<8x384xi32>
    %10 = arith.addi %9, %8 : vector<8x384xi32>
    %c320_i32 = arith.constant 320 : i32
    %11 = vector.broadcast %c320_i32 : i32 to vector<8x384xi32>
    %12 = arith.cmpi slt, %10, %11 : vector<8x384xi32>
    %cst_6 = arith.constant 0xFF800000 : f32
    %13 = vector.broadcast %cst_6 : f32 to vector<8x384xf32>
    %14 = arith.select %12, %5, %13 : vector<8x384xi1>, vector<8x384xf32>
    %c0_7 = arith.constant 0 : index
    %c0_8 = arith.constant 0 : index
    %15 = vector.load %arg6[%c0_7, %c0_8] : memref<8x1xf32, #tpu.memory_space<vmem>>, vector<8x1xf32>
    %cst_9 = arith.constant dense<0xFF800000> : vector<8xf32>
    %16 = vector.multi_reduction <maximumf>, %14, %cst_9 [1] : vector<8x384xf32> to vector<8xf32>
    %17 = vector.shape_cast %16 : vector<8xf32> to vector<8x1xf32>
    %18 = arith.maximumf %15, %17 : vector<8x1xf32>
    %19 = arith.subf %15, %18 : vector<8x1xf32>
    %20 = math.exp %19 : vector<8x1xf32>
    %c0_10 = arith.constant 0 : index
    %c0_11 = arith.constant 0 : index
    %21 = vector.load %arg7[%c0_10, %c0_11] : memref<8x1xf32, #tpu.memory_space<vmem>>, vector<8x1xf32>
    %22 = arith.mulf %20, %21 : vector<8x1xf32>
    %23 = vector.broadcast %18 : vector<8x1xf32> to vector<8x384xf32>
    %24 = arith.subf %14, %23 : vector<8x384xf32>
    %25 = math.exp %24 : vector<8x384xf32>
    %cst_12 = arith.constant dense<0.000000e+00> : vector<8xf32>
    %26 = vector.multi_reduction <add>, %25, %cst_12 [1] : vector<8x384xf32> to vector<8xf32>
    %27 = vector.shape_cast %26 : vector<8xf32> to vector<8x1xf32>
    %28 = arith.addf %22, %27 : vector<8x1xf32>
    %c0_13 = arith.constant 0 : index
    %c0_14 = arith.constant 0 : index
    %29 = vector.load %arg7[%c0_13, %c0_14] : memref<8x1xf32, #tpu.memory_space<vmem>>, vector<8x1xf32>
    tpu.vector_store %arg7[%c0_13, %c0_14], %28 {strides = array<i32>} : memref<8x1xf32, #tpu.memory_space<vmem>>, vector<8x1xf32>,
    %c0_15 = arith.constant 0 : index
    %c0_16 = arith.constant 0 : index
    %30 = vector.load %arg6[%c0_15, %c0_16] : memref<8x1xf32, #tpu.memory_space<vmem>>, vector<8x1xf32>
    tpu.vector_store %arg6[%c0_15, %c0_16], %18 {strides = array<i32>} : memref<8x1xf32, #tpu.memory_space<vmem>>, vector<8x1xf32>,
    %c0_i32_17 = arith.constant 0 : i32
    %31 = arith.cmpi eq, %arg1, %c0_i32_17 : i32
    %32 = arith.extui %31 : i1 to i32
    %c0_i32_18 = arith.constant 0 : i32
    %33 = arith.cmpi ne, %32, %c0_i32_18 : i32
    scf.if %33 {
      %c0_19 = arith.constant 0 : index
      %c0_20 = arith.constant 0 : index
      %34 = vector.load %arg6[%c0_19, %c0_20] : memref<8x1xf32, #tpu.memory_space<vmem>>, vector<8x1xf32>
      %c0_21 = arith.constant 0 : index
      %c0_22 = arith.constant 0 : index
      %35 = vector.load %arg7[%c0_21, %c0_22] : memref<8x1xf32, #tpu.memory_space<vmem>>, vector<8x1xf32>
      %36 = math.log %35 : vector<8x1xf32>
      %37 = arith.addf %34, %36 : vector<8x1xf32>
      %c0_23 = arith.constant 0 : index
      %c0_24 = arith.constant 0 : index
      %38 = vector.load %arg5[%c0_23, %c0_24] : memref<8x1xf32, #tpu.memory_space<vmem>>, vector<8x1xf32>
      tpu.vector_store %arg5[%c0_23, %c0_24], %37 {strides = array<i32>} : memref<8x1xf32, #tpu.memory_space<vmem>>, vector<8x1xf32>,
    } else {
    }
    return
  }
  func.func @transform_0(%arg0: i32, %arg1: i32) -> (i32, i32) {
    %c0_i32 = arith.constant 0 : i32
    %c0_i32_0 = arith.constant 0 : i32
    return %arg0, %c0_i32 : i32, i32
  }
  func.func @transform_1(%arg0: i32, %arg1: i32) -> (i32, i32) {
    %c0_i32 = arith.constant 0 : i32
    %c0_i32_0 = arith.constant 0 : i32
    return %c0_i32, %arg1 : i32, i32
  }
  func.func @transform_2(%arg0: i32, %arg1: i32) -> (i32, i32) {
    %c0_i32 = arith.constant 0 : i32
    return %arg0, %arg1 : i32, i32
  }
  func.func @transform_3(%arg0: i32, %arg1: i32) -> (i32, i32) {
    %c0_i32 = arith.constant 0 : i32
    %c0_i32_0 = arith.constant 0 : i32
    return %arg0, %c0_i32 : i32, i32
  }
}

</mosaic_0001>

<bundles_post_ra>
// kernel: gpt2ft_forward.3
= control target key start
LH: loop header
LB: loop body
LE: loop exit
PB: predicated region body
PF: predicated region fallthrough
CT: control target
= control target key end

     0   :  { %7 = vsyncpa [#allocation3], 0  ;;  %s578_s0 = inlined_call_operand.vmem [shape: f32[16,384], index: 0, kind: input, shape index: {}]   ;;  %s579_s1 = inlined_call_operand.vmem [shape: f32[16,1], index: 1, kind: input, shape index: {}]   ;;  %s580_s2 = inlined_call_operand.hbm [shape: f32[16,384], index: 2, kind: output, shape index: {}]  }
   0x1   :  { %9 = vsyncpa [#allocation3 + $0x1], 0  ;;  %s478_s9 = smov 0   ;;  %s480_s10 = smov 0  }
   0x2   :  { %s482_s11 = smov 0   ;;  %s484_s12 = smov 0  }
   0x3   :  { %s486_s13 = smov 0   ;;  %s488_s14 = smov 0  }
   0x4 LB: > { %s312_s15 = sadd.s32 4294967295, %s460_s14   ;;  %s313_s16 = sadd.s32 4294967294, %s460_s14   ;;  %s460_s14 = sphi %s488_s14, %s15_s14   ;;  %s456_s13 = sphi %s486_s13, %s587_s13   ;;  %s452_s12 = sphi %s484_s12, %s586_s12   ;;  %s448_s11 = sphi %s482_s11, %s585_s11   ;;  %s444_s10 = sphi %s480_s10, %s584_s10   ;;  %s440_s9 = sphi %s478_s9, %s583_s9  }
   0x5   : > { %s27_s17 = sadd.s32 1, %s456_s13  ;;  %s90_s18 = sadd.s32 1, %s448_s11 }
   0x6   : > { %p29_p0 = scmp.ge.s32.totalorder %s27_s17, 2  ;;  %p100_p1 = scmp.ne.s32.totalorder %s448_s11, %s444_s10 }
   0x7   : > { %p101_p2 = scmp.eq.s32.totalorder %s312_s15, 1  ;;  %p106_p3 = scmp.ne.s32.totalorder %s444_s10, %s440_s9 }
   0x8   : > { %s589_s17 = smov (%p29_p0, %s27_s17), 0  ;;  %p107_p5 = scmp.eq.s32.totalorder %s313_s16, 1 }
   0x9   : > { %p518_p4 = por %p101_p2, %p100_p1  ;;  %s85_s20 = ssub.s32 %s456_s13, %s589_s17 }
   0xa   : > { %p316_p6 = scmp.ge.s32.totalorder %s460_s14, 1  ;;  %p88_p7 = scmp.eq.s32.totalorder %s85_s20, 0 }
   0xb   : > { %p525_p8 = por %p107_p5, %p106_p3  ;;  %p145_p9 = scmp.lt.s32.totalorder %s460_s14, 3 }
   0xc   : > { %s531_s22 = scalar_select %p88_p7, %s448_s11, %s90_s18  }
   0xd   : > { %p146_p10 = pnand %p316_p6, %p145_p9 }
   0xe   : > { %p176_p11 = scmp.lt.s32.totalorder (!%p146_p10), %s452_s12, 1  ;;  %s172_s28 = sand.u32 (!%p146_p10), 1, %s444_s10  }
   0xf   : > { %149 = sbr.rel (%p146_p10) target bundleno = 147 (0x93), region = 28 }
  0x10   : > { %s322_s30 = smul.u32 (!%p146_p10), 24, %s172_s28 }
  0x11   : > { %s324_s3 = smul.u32 (!%p146_p10), 24, %s452_s12 }
  0x12   : > { %s174_s16 = scalar_lea.vmem (!%p146_p10), [#allocation2], %s322_s30 }
  0x13   : > { %s219_s15 = scalar_lea.hbm (!%p146_p10), %s580_s2, %s324_s3  ;;  %s221_s18 = sshll.u32 (!%p146_p10), %s174_s16, 4  ;;  %s222_s18 = int_to_ptr.vmem [resolvable:$true] %s221_s18 }
  0x14   : > { %v462_v0 = vmov 0   ;;  %s177_s23 = scalar_select %p176_p11, %s452_s12, 1 }
  0x15   : > { %381 = vset.pattern.permute.xlu0 %v462_v0  ;;  %s223_s20 = sshll.u32 %s219_s15, 4  ;;  %s206_s12 = scalar_lea.sflag [#allocation3], %s172_s28  ;;  %s224_s20 = int_to_ptr.hbm [resolvable:$true] %s223_s20 }
  0x16   : > { %s318_s24 = sshll.u32 %s177_s23, 3  ;;  %s323_s29 = smul.u32 24, %s177_s23 }
  0x17   : > { %s188_s27 = scalar_lea.vmem %s579_s1, %s318_s24  ;;  %s396_s23 = sshra.s32 %s224_s20, 4  ;;  %s397_s23 = int_to_ptr.hbm [resolvable:$true] %s396_s23 }
  0x18   : > { %v193_v1 = vld [vmem:[%s188_s27] sm:$0xff]  ;;  %s183_s6 = scalar_lea.vmem %s578_s0, %s323_s29  ;;  %s398_s24 = scalar_lea.hbm %s397_s23, 24 }
  0x19   : > { %196 = vperm.xlu0 %381, %v193_v1   ;;  %v190_v2 = vld [vmem:[%s183_s6] sm:$0xff]  ;;  %v191_v3 = vld [vmem:[%s183_s6 + $0x8] sm:$0xff]  ;;  %v192_v4 = vld [vmem:[%s183_s6 + $0x10] sm:$0xff]  ;;  %p399_p12 = scmp.ne.s32.totalorder %s397_s23, %s398_s24  ;;  %s402_s27 = scalar_lea.hbm %s580_s2, 48 }
  0x1a   : > { %p403_p1 = scmp.lt.s32.totalorder %s397_s23, %s580_s2  ;;  %p404_p2 = scmp.lt.s32.totalorder %s402_s27, %s398_s24 }
  0x1b   : > { %p400_p13 = pnand %p399_p12, %p518_p4 }
  0x1c   : > { %p405_p3 = por %p404_p2, %p403_p1 }
  0x1d   : > { %p401_p0 = pneg %p400_p13 }
  0x1f   : > { %p406_p5 = pnand %p405_p3, %p401_p0 }
  0x8b   : > { %v197_v5 = vpop.permute.xlu0 %196 }
  0x8c   : > { %v199_v6 = vsub.f32 %v190_v2, %v197_v5  ;;  %v200_v7 = vsub.f32 %v191_v3, %v197_v5  ;;  %v201_v8 = vsub.f32 %v192_v4, %v197_v5 }
  0x8e   : > { %202 = vst [vmem:[%s174_s16] sm:$0xff] %v199_v6 }
  0x8f   : > { %203 = vst [vmem:[%s174_s16 + $0x8] sm:$0xff] %v200_v7 }
  0x90   : > { %204 = vst [vmem:[%s174_s16 + $0x10] sm:$0xff] %v201_v8 }
  0x91   : > { %409 = shalt.err (!%p406_p5)
}
  0x92   : > { %325 = dma.vmem_to_hbm [thread:$0]  (%p518_p4), %s222_s18, 384, %s224_s20, %s206_s12  }
  0x93 PF: > { %p331_p6 = scmp.ge.s32.totalorder %s460_s14, 2  ;;  %s235_s28 = sand.u32 1, %s440_s9  }
  0x94   : > { %s236_s3 = scalar_lea.sflag [#allocation3], %s235_s28 }
  0x95   : > { %p328_p7 = pnand %p331_p6, %p525_p8 }
  0x97   : > { %p329_p9 = pneg %p328_p7 }
  0x99   : > { %435 = dma.done.wait (%p329_p9), %s236_s3, 384  }
  0x9a   : > { %437 = vsyncadd (%p329_p9), %s236_s3, 4294966912  ;;  %s15_s14 = sadd.s32 1, %s460_s14   ;;  %s583_s9 = smov %s444_s10 }
  0x9b   : > { %p12_p10 = scmp.ge.s32.totalorder %s15_s14, 4   ;;  %s584_s10 = smov %s448_s11 }
  0x9c   : > { %s585_s11 = smov %s531_s22  ;;  %s586_s12 = smov %s456_s13 }
  0x9d   : > { %s587_s13 = smov %s589_s17  ;;  %14 = sbr.rel (!%p12_p10) target bundleno = 4 (0x4), region = 66 }
  0xa2   :  { %242 = vsyncpa [#allocation3], 1 }
  0xa3   :  { %244 = vsyncpa [#allocation3 + $0x1], 1 }

// kernel: gpt2ft_forward.2
= control target key start
LH: loop header
LB: loop body
LE: loop exit
PB: predicated region body
PF: predicated region fallthrough
CT: control target
= control target key end

     0   :  { %s703_s12 = smov 0   ;;  %s705_s13 = smov 0   ;;  %s825_s0 = inlined_call_operand.vmem [shape: bf16[16,64], index: 0, kind: input, shape index: {}]   ;;  %s826_s1 = inlined_call_operand.vmem [shape: bf16[64,384], index: 1, kind: input, shape index: {}]   ;;  %s827_s2 = inlined_call_operand.vmem [shape: f32[16,384], index: 2, kind: output, shape index: {0}]   ;;  %s828_s3 = inlined_call_operand.vmem [shape: f32[16,1], index: 3, kind: output, shape index: {1}]  }
   0x1   :  { %s707_s14 = smov 0  }
   0x2 LB: > { %s26_s15 = sadd.s32 1, %s674_s13  ;;  %p548_p0 = scmp.ge.s32.totalorder %s678_s14, 1  ;;  %s678_s14 = sphi %s707_s14, %s14_s14   ;;  %s674_s13 = sphi %s705_s13, %s830_s13   ;;  %s670_s12 = sphi %s703_s12, %s829_s12  }
   0x3   : > { %p28_p1 = scmp.ge.s32.totalorder %s26_s15, 2  ;;  %p164_p2 = scmp.lt.s32.totalorder %s678_s14, 3 }
   0x5   : > { %s832_s15 = smov (%p28_p1, %s26_s15), 0  ;;  %p165_p3 = pnand %p548_p0, %p164_p2 }
   0x6   : > { %p200_p4 = scmp.lt.s32.totalorder (!%p165_p3), %s670_s12, 1 }
   0x7   : > { %168 = sbr.rel (%p165_p3) target bundleno = 553 (0x229), region = 28 }
   0xc   : > { %v590_v0 = vld [vmem:[%s826_s1 + $0x48] sm:$0xf]  ;;  %v615_v1 = vld [vmem:[%s826_s1 + $0x50] sm:$0xf0]  ;;  %v614_v2 = vld [vmem:[%s826_s1 + $0x4c] sm:$0xf]  ;;  %v360_v38 = vlaneseq }
   0xd   : > { %v591_v3 = vor.u32 %v615_v1, %v590_v0  ;;  %v592_v4 = vld [vmem:[%s826_s1 + $0x54] sm:$0xf0]  ;;  %v598_v5 = vld [vmem:[%s826_s1 + $0x50] sm:$0xf]  ;;  %v616_v6 = vld [vmem:[%s826_s1 + $0x58] sm:$0xf0] }
   0xe   : > { %v595_v7 = vor.u32 %v614_v2, %v592_v4  ;;  %v599_v8 = vor.u32 %v616_v6, %v598_v5  ;;  %v578_v9 = vld [vmem:[%s826_s1 + $0x30] sm:$0xf]  ;;  %v612_v10 = vld [vmem:[%s826_s1 + $0x38] sm:$0xf0]  ;;  %v611_v11 = vld [vmem:[%s826_s1 + $0x34] sm:$0xf] }
   0xf   : > { %321 = vmatpush.bf16.msra.mxu0 %v591_v3  ;;  %v579_v12 = vor.u32 %v612_v10, %v578_v9  ;;  %v580_v13 = vld [vmem:[%s826_s1 + $0x3c] sm:$0xf0]  ;;  %v586_v14 = vld [vmem:[%s826_s1 + $0x38] sm:$0xf]  ;;  %v613_v15 = vld [vmem:[%s826_s1 + $0x40] sm:$0xf0] }
  0x10   : > { %334 = vmatpush.bf16.msra.mxu1 %v595_v7  ;;  %347 = vmatpush.bf16.msra.mxu2 %v599_v8  ;;  %v583_v16 = vor.u32 %v611_v11, %v580_v13  ;;  %v587_v17 = vor.u32 %v613_v15, %v586_v14  ;;  %v566_v18 = vld [vmem:[%s826_s1 + $0x18] sm:$0xf]  ;;  %v609_v19 = vld [vmem:[%s826_s1 + $0x20] sm:$0xf0]  ;;  %v608_v20 = vld [vmem:[%s826_s1 + $0x1c] sm:$0xf] }
  0x11   : > { %v568_v21 = vld [vmem:[%s826_s1 + $0x24] sm:$0xf0]  ;;  %v574_v22 = vld [vmem:[%s826_s1 + $0x20] sm:$0xf]  ;;  %v610_v23 = vld [vmem:[%s826_s1 + $0x28] sm:$0xf0]  ;;  %v567_v24 = vor.u32 %v609_v19, %v566_v18 }
  0x12   : > { %v554_v25 = vld [vmem:[%s826_s1] sm:$0xf]  ;;  %v571_v26 = vor.u32 %v608_v20, %v568_v21  ;;  %v575_v27 = vor.u32 %v610_v23, %v574_v22  ;;  %v606_v28 = vld [vmem:[%s826_s1 + $0x8] sm:$0xf0]  ;;  %v605_v29 = vld [vmem:[%s826_s1 + $0x4] sm:$0xf] }
  0x13   : > { %322 = vmatpush.bf16.msra.mxu0 %v579_v12  ;;  %v556_v30 = vld [vmem:[%s826_s1 + $0xc] sm:$0xf0]  ;;  %v562_v31 = vld [vmem:[%s826_s1 + $0x8] sm:$0xf]  ;;  %v607_v32 = vld [vmem:[%s826_s1 + $0x10] sm:$0xf0]  ;;  %v555_v33 = vor.u32 %v606_v28, %v554_v25 }
  0x14   : > { %335 = vmatpush.bf16.msra.mxu1 %v583_v16  ;;  %348 = vmatpush.bf16.msra.mxu2 %v587_v17  ;;  %s834_s12 = smov (!%p200_p4, %s670_s12), 1  ;;  %v559_v34 = vor.u32 %v605_v29, %v556_v30  ;;  %v563_v35 = vor.u32 %v607_v32, %v562_v31  ;;  %vm313_vm0 = vcmask 523264   ;;  %vm229_vm1 = vcmask 7168  }
  0x15   : > { %s549_s18 = sshll.u32 %s834_s12, 2  ;;  %v680_v37 = vmov -inf   ;;  %s617_s22 = smul.u32 24, %s834_s12  ;;  %v361_v39 = vand.u32 127, %v360_v38  ;;  %v681_v50 = vmov 0   ;;  %v682_v51 = vmov 0.0  }
  0x16   : > { %s203_s21 = scalar_lea.vmem %s825_s0, %s549_s18  ;;  %230 = vst.msk [vmem:[#allocation2] sm:$0xff] %vm229_vm1, %v680_v37  ;;  %645 = vset.pattern.permute.xlu0 %v681_v50  ;;  %s551_s26 = sshll.u32 %s834_s12, 3 }
  0x17   : > { %323 = vmatpush.bf16.msra.mxu0 %v567_v24  ;;  %v232_v36 = vld [vmem:[%s203_s21] sm:$0xf]  ;;  %s218_s25 = scalar_lea.vmem %s827_s2, %s617_s22  ;;  %v363_v42 = vadd.s32 256, %v361_v39  ;;  %231 = vst.msk [vmem:[#allocation3] sm:$0xff] %vm229_vm1, %v682_v51  ;;  %s223_s29 = scalar_lea.vmem %s828_s3, %s551_s26 }
  0x18   : > { %336 = vmatpush.bf16.msra.mxu1 %v571_v26  ;;  %349 = vmatpush.bf16.msra.mxu2 %v575_v27 }
  0x19   : > { %vm370_vm2 = vcmp.lt.s32.totalorder %v363_v42, 320 }
  0x1b   : > { %324 = vmatpush.bf16.msra.mxu0 %v555_v33 }
  0x1c   : > { %337 = vmatpush.bf16.msra.mxu1 %v559_v34  ;;  %350 = vmatpush.bf16.msra.mxu2 %v563_v35 }
  0x1d   : > { %v374_v52 = vld [vmem:[#allocation2] sm:$0xff] }
  0x1e   : > { %600 = vmatmul.msk.bf16.vlgmr.msra.gmra.mxu0 %vm313_vm0, %v232_v36  ;;  %v383_v6 = vld [vmem:[#allocation3] sm:$0xff] }
  0x1f   : > { %601 = vmatmul.msk.bf16.vlgmr.msra.gmra.mxu1 %vm313_vm0, %v232_v36  ;;  %602 = vmatmul.msk.bf16.vlgmr.msra.gmra.mxu2 %vm313_vm0, %v232_v36 }
  0x9b   : > { %v326_v40 = vpop.f32.mrf.mxu0 }
  0x9c   : > { %356 = vst [vmem:[%s218_s25] sm:$0xff] %v326_v40  ;;  %v339_v41 = vpop.f32.mrf.mxu1 }
  0x9d   : > { %357 = vst [vmem:[%s218_s25 + $0x8] sm:$0xff] %v339_v41  ;;  %v375_v43 = vmax.f32 %v326_v40, %v339_v41 }
  0xa2   : > { %v352_v44 = vpop.f32.mrf.mxu2 }
  0xa3   : > { %358 = vst [vmem:[%s218_s25 + $0x10] sm:$0xff] %v352_v44  ;;  %v328_v45 = vpop.f32.mrf.mxu0  ;;  %v373_v46 = vsel %vm370_vm2, %v352_v44, -inf }
  0xa4   : > { %v341_v47 = vpop.f32.mrf.mxu1  ;;  %v376_v48 = vmax.f32 %v375_v43, %v373_v46 }
  0xa6   : > { %377 = vmax.xlane.f32.xlu0 %v376_v48 }
  0xaa   : > { %v354_v49 = vpop.f32.mrf.mxu2 }
 0x119   : > { %v378_v53 = vpop.xlane.xlu0 %377 }
 0x11a   : > { %v379_v54 = vmax.f32 %v374_v52, %v378_v53 }
 0x11c   : > { %v380_v55 = vsub.f32 %v374_v52, %v379_v54  ;;  %406 = vst.msk [vmem:[#allocation2] sm:$0xff] %vm229_vm1, %v379_v54  ;;  %387 = vperm.xlu0 %645, %v379_v54  }
 0x11e   : > { %v381_v4 = vmul.f32 1.442695, %v380_v55 }
 0x123   : > { %v410_v13 = vld [vmem:[#allocation2] sm:$0xff] }
 0x18e   : > { %v388_v56 = vpop.permute.xlu0 %387 }
 0x18f   : > { %v390_v57 = vsub.f32 %v326_v40, %v388_v56  ;;  %v391_v58 = vsub.f32 %v339_v41, %v388_v56  ;;  %v392_v59 = vsub.f32 %v373_v46, %v388_v56 }
 0x191   : > { %v393_v60 = vmul.f32 1.442695, %v390_v57  ;;  %v395_v61 = vmul.f32 1.442695, %v391_v58  ;;  %v397_v62 = vmul.f32 1.442695, %v392_v59 }
 0x193   : > { %646 = vpow2.f32 %v393_v60 }
 0x194   : > { %648 = vpow2.f32 %v395_v61 }
 0x195   : > { %650 = vpow2.f32 %v397_v62 }
 0x196   : > { %652 = vpow2.f32 %v381_v4 }
 0x199   : > { %v647_v63 = vpop.eup %646 }
 0x19a   : > { %v649_v0 = vpop.eup %648 }
 0x19b   : > { %v399_v1 = vadd.f32 %v649_v0, %v647_v63  ;;  %v651_v2 = vpop.eup %650 }
 0x19c   : > { %v653_v5 = vpop.eup %652 }
 0x19d   : > { %v400_v3 = vadd.f32 %v651_v2, %v399_v1  ;;  %v384_v7 = vmul.f32 %v653_v5, %v383_v6 }
 0x19f   : > { %401 = vadd.xlane.f32.xlu1 %v400_v3 }
 0x212   : > { %v402_v8 = vpop.xlane.xlu1 %401 }
 0x213   : > { %v403_v9 = vadd.f32 %v402_v8, %v384_v7 }
 0x215   : > { %405 = vst.msk [vmem:[#allocation3] sm:$0xff] %vm229_vm1, %v403_v9 }
 0x21c   : > { %v411_v10 = vld [vmem:[#allocation3] sm:$0xff] }
 0x21d   : > { %654 = vlog2.f32 %v411_v10 }
 0x223   : > { %v655_v11 = vpop.eup %654 }
 0x224   : > { %v413_v12 = vmul.f32 0.6931472, %v655_v11 }
 0x226   : > { %v414_v14 = vadd.f32 %v413_v12, %v410_v13 }
 0x228   : > { %415 = vst.msk [vmem:[%s223_s29] sm:$0xff] %vm229_vm1, %v414_v14 }
 0x229 PF: > { %s14_s14 = sadd.s32 1, %s678_s14   ;;  %s829_s12 = smov %s674_s13 }
 0x22a   : > { %p11_p5 = scmp.ge.s32.totalorder %s14_s14, 4   ;;  %s830_s13 = smov %s832_s15 }
 0x22c   :  { %13 = sbr.rel (!%p11_p5) target bundleno = 2 (0x2), region = 81 }

</bundles_post_ra>
